<compile_context>
chip_gen: v6e
topology: v6e:2x2x1
jax: 0.10.0
libtpu: 0.0.40
codegen_flags: <defaults>
</compile_context>

<pallas_src>
import functools

import numpy as np
import jax
import jax.numpy as jnp
from jax.experimental import pallas as pl
from jax.experimental.pallas import tpu as pltpu

NUM_EMOTIONS = 27
NE_PAD = 32            # emotion axis padded to 32 lanes inside the kernel
OUT_LANES = 128        # lane-dense output slab width per batch row
_NEG = -1e30           # softmax pad logits -> exp() underflows to exactly 0 in f32


def _round_up(x, m):
    return (x + m - 1) // m * m


# --------------------------------------------------------------------------
# Pallas kernel: whole forward pass for one batch tile, everything in VMEM.
#   x_ref    : (TB, R1)  [onehot27 | ctx H | vad 3 | zero pad]
#   wmat_ref : (R1+2H+27*H2, max(H,32)) packed weight slab
#   wrow_ref : (8, KW)   packed row slab (vad weights, folded biases)
#   out_ref  : (TB, 128) [probs32 | inten32 | zeros64]
# --------------------------------------------------------------------------
def _emotional_kernel(x_ref, wmat_ref, wrow_ref, out_ref, *, H, H2, R1):
    f32 = jnp.float32
    NE = NUM_EMOTIONS
    KI = NE * H2
    TB = x_ref.shape[0]
    o_w2, o_w3, o_wb = R1, R1 + H, R1 + 2 * H

    # ---------------- transition head: 3 MXU matmuls (gather folded into W1f) ----
    x = x_ref[...]                                                       # (TB, R1)
    h1 = jnp.maximum(
        jnp.dot(x, wmat_ref[0:R1, 0:H], preferred_element_type=f32)
        + wrow_ref[4:5, 0:H], 0.0)                                       # (TB, H)
    h2 = jnp.maximum(
        jnp.dot(h1, wmat_ref[o_w2:o_w2 + H, 0:H], preferred_element_type=f32)
        + wrow_ref[5:6, 0:H], 0.0)                                       # (TB, H)
    logits = (jnp.dot(h2, wmat_ref[o_w3:o_w3 + H, 0:NE_PAD],
                      preferred_element_type=f32)
              + wrow_ref[6:7, 0:NE_PAD])                                 # (TB, 32), pads=-inf

    m = jnp.max(logits, axis=-1, keepdims=True)
    e = jnp.exp(logits - m)
    probs = e / jnp.sum(e, axis=-1, keepdims=True)                       # pad cols -> 0

    # ---------------- intensity head: pure MXU, no 3-D tensors / xlane reduces ---
    vad = x_ref[:, NE + H:NE + H + 3]                                    # (TB, 3)
    ct = jnp.dot(vad, wrow_ref[0:3, 0:KI], preferred_element_type=f32)   # (TB, 27*H2)
    hI = jnp.maximum(ct + wrow_ref[3:4, 0:KI], 0.0)                      # (TB, 27*H2)
    ilogit = (jnp.dot(hI, wmat_ref[o_wb:o_wb + KI, 0:NE_PAD],
                      preferred_element_type=f32)
              + wrow_ref[7:8, 0:NE_PAD])                                 # (TB, 32)
    inten = jax.nn.sigmoid(ilogit)

    # lane-dense output block via direct sub-slice stores (no vreg concat)
    out_ref[:, 0:NE_PAD] = probs
    out_ref[:, NE_PAD:2 * NE_PAD] = inten
    out_ref[:, 2 * NE_PAD:] = jnp.zeros((TB, OUT_LANES - 2 * NE_PAD), f32)


# --------------------------------------------------------------------------
# One-time parameter preprocessing: fold the embedding gather and biases into
# two packed slabs (NOT per forward call).
# --------------------------------------------------------------------------
def pack_params(params):
    f64 = np.float64
    E   = np.asarray(params["E"],  f64)          # (27, H)
    W1  = np.asarray(params["W1"], f64)          # (H, 2H+3)  torch [out, in]
    b1  = np.asarray(params["b1"], f64)
    W2  = np.asarray(params["W2"], f64)
    b2  = np.asarray(params["b2"], f64)
    W3  = np.asarray(params["W3"], f64)          # (27, H)
    b3  = np.asarray(params["b3"], f64)
    Wi1 = np.asarray(params["Wi1"], f64)         # (H2, H+3)
    bi1 = np.asarray(params["bi1"], f64)
    Wi2 = np.asarray(params["Wi2"], f64)         # (1, H2)
    bi2 = np.asarray(params["bi2"], f64)

    H, H2 = E.shape[1], Wi1.shape[0]
    NE = NUM_EMOTIONS
    KI = NE * H2
    WMAX = max(H, NE_PAD)
    K1 = NE + H + 3
    R1 = _round_up(K1, 8)

    # fused transition L1:  [onehot | ctx | vad] @ W1f  ==  [E[ce]|ctx|vad] @ W1^T
    M1  = E @ W1[:, :H].T                                               # (27, H)
    W1f = np.concatenate([M1, W1[:, H:2 * H].T, W1[:, 2 * H:].T], 0)    # (K1, H)
    W1f = np.pad(W1f, ((0, R1 - K1), (0, 0)))                           # (R1, H), 8-aligned

    W2T = W2.T                                                          # (H, H)
    W3p = np.pad(W3.T, ((0, 0), (0, NE_PAD - NE)))                      # (H, 32)

    # intensity head as two matmuls
    A     = E @ Wi1[:, :H].T + bi1[None, :]      # (27, H2), embedding + bias folded
    Aflat = A.reshape(1, KI)                     # (1, 27*H2)
    WvT   = np.tile(Wi1[:, H:].T, (1, NE))       # (3, 27*H2): vad weights per emotion
    Wblk  = np.kron(np.eye(NE), Wi2.T)           # (27*H2, 27): block-diag wi2
    Wblk  = np.pad(Wblk, ((0, 0), (0, NE_PAD - NE)))

    def padw(mat):                               # pad columns to slab width
        return np.pad(mat, ((0, 0), (0, WMAX - mat.shape[1])))

    wmat = np.concatenate([padw(W1f), padw(W2T), padw(W3p), padw(Wblk)], 0)

    KW = _round_up(max(KI, WMAX), 128)           # lane-dense row slab

    def padr(vec, fill=0.0):
        row = np.full((1, KW), fill, f64)
        row[0, :vec.shape[0]] = vec
        return row

    b3p = np.concatenate([b3, np.full((NE_PAD - NE,), _NEG)])
    wrow = np.concatenate([
        np.pad(WvT,   ((0, 0), (0, KW - KI))),   # rows 0..2 : tiled Wi1_vad^T
        np.pad(Aflat, ((0, 0), (0, KW - KI))),   # row  3    : (E@Wi1_emb^T + bi1) flat
        padr(b1),                                # row  4
        padr(b2),                                # row  5
        padr(b3p),                               # row  6    : b3 padded with -1e30
        np.full((1, KW), float(bi2[0]), f64),    # row  7    : bi2 broadcast
    ], 0)                                        # (8, KW)

    return {"wmat": jnp.asarray(wmat, jnp.float32),
            "wrow": jnp.asarray(wrow, jnp.float32),
            "H": int(H), "H2": int(H2), "R1": int(R1)}


# --------------------------------------------------------------------------
# Forward wrapper: input glue (one-hot, lane/batch padding) + pallas_call.
# --------------------------------------------------------------------------
def emotional_transition_forward(packed, current_emotion, context, vad, block_b=64):
    return _forward(packed["wmat"], packed["wrow"], current_emotion, context, vad,
                    H=packed["H"], H2=packed["H2"], R1=packed["R1"], block_b=block_b)


@functools.partial(jax.jit, static_argnames=("H", "H2", "R1", "block_b"))
def _forward(wmat, wrow, current_emotion, context, vad, *, H, H2, R1, block_b):
    B = current_emotion.shape[0]
    NE = NUM_EMOTIONS
    K1 = NE + H + 3

    # One lane-padded activation slab; the one-hot gather glue lives out here.
    onehot = jax.nn.one_hot(current_emotion, NE, dtype=jnp.float32)      # (B, 27)
    x = jnp.concatenate(
        [onehot, context.astype(jnp.float32), vad.astype(jnp.float32)], axis=-1)
    x = jnp.pad(x, ((0, 0), (0, R1 - K1)))                               # (B, R1)

    TB = min(block_b, _round_up(B, 8))           # batch tile (multiple of 8)
    Bp = _round_up(B, TB)
    if Bp != B:
        x = jnp.pad(x, ((0, Bp - B), (0, 0)))

    kernel = functools.partial(_emotional_kernel, H=H, H2=H2, R1=R1)
    out = pl.pallas_call(
        kernel,
        out_shape=jax.ShapeDtypeStruct((Bp, OUT_LANES), jnp.float32),
        grid_spec=pltpu.PrefetchScalarGridSpec(
            num_scalar_prefetch=0,
            grid=(Bp // TB,),
            in_specs=[
                pl.BlockSpec((TB, R1), lambda i: (i, 0)),      # batch-tiled activations
                pl.BlockSpec(wmat.shape, lambda i: (0, 0)),    # weights resident
                pl.BlockSpec(wrow.shape, lambda i: (0, 0)),    # across batch tiles
            ],
            out_specs=pl.BlockSpec((TB, OUT_LANES), lambda i: (i, 0)),
        ),
        compiler_params=pltpu.CompilerParams(
            dimension_semantics=("parallel",)),                # v7x: 2nd TC engaged
    )(x, wmat, wrow)

    probs = out[:B, :NUM_EMOTIONS]
    inten = out[:B, NE_PAD:NE_PAD + NUM_EMOTIONS]
    return probs, inten


# --------------------------------------------------------------------------
# Deterministic parameter init (shapes from the module's __init__).
# --------------------------------------------------------------------------
def init_params(key, hidden_dim):
    H, H2 = hidden_dim, hidden_dim // 2
    ks = jax.random.split(key, 12)

    def lin(kw, kb, out_f, in_f):
        bound = 1.0 / jnp.sqrt(in_f)
        w = jax.random.uniform(kw, (out_f, in_f), jnp.float32, -bound, bound)
        b = jax.random.uniform(kb, (out_f,), jnp.float32, -bound, bound)
        return w, b

    E = jax.random.normal(ks[0], (NUM_EMOTIONS, H), jnp.float32)
    W1, b1 = lin(ks[1], ks[2], H, 2 * H + 3)
    W2, b2 = lin(ks[3], ks[4], H, H)
    W3, b3 = lin(ks[5], ks[6], NUM_EMOTIONS, H)
    Wi1, bi1 = lin(ks[7], ks[8], H2, H + 3)
    Wi2, bi2 = lin(ks[9], ks[10], 1, H2)
    return dict(E=E, W1=W1, b1=b1, W2=W2, b2=b2, W3=W3, b3=b3,
                Wi1=Wi1, bi1=bi1, Wi2=Wi2, bi2=bi2)


# --------------------------------------------------------------------------
# Pure-JAX reference (mirrors the PyTorch forward, batched generalization).
# --------------------------------------------------------------------------
def reference_forward(params, current_emotion, context, vad):
    E = params["E"]
    emb = E[current_emotion]
    combined = jnp.concatenate([emb, context, vad], axis=-1)
    h1 = jax.nn.relu(combined @ params["W1"].T + params["b1"])
    h2 = jax.nn.relu(h1 @ params["W2"].T + params["b2"])
    logits = h2 @ params["W3"].T + params["b3"]
    probs = jax.nn.softmax(logits, axis=-1)
    intens = []
    B = vad.shape[0]
    for i in range(NUM_EMOTIONS):
        es = jnp.concatenate(
            [jnp.broadcast_to(E[i], (B, E.shape[1])), vad], axis=-1)
        hi = jax.nn.relu(es @ params["Wi1"].T + params["bi1"])
        intens.append(jax.nn.sigmoid(hi @ params["Wi2"].T + params["bi2"]))
    return probs, jnp.concatenate(intens, axis=-1)


if __name__ == "__main__":
    HIDDEN = 32

    key = jax.random.PRNGKey(0)
    kp = jax.random.fold_in(key, 0)

    params = init_params(kp, HIDDEN)
    packed = pack_params(params)          # one-time preprocessing (hoisted glue)

    # batch=128 -> 2 "parallel" grid tiles (amortizes fixed cost, feeds both
    # v7x TensorCores); batch=5 exercises the ragged-batch padding path.
    for batch in (128, 5):
        kb = jax.random.fold_in(key, batch)
        k1, k2, k3 = jax.random.split(kb, 3)
        current_emotion = jax.random.randint(k1, (batch,), 0, NUM_EMOTIONS, jnp.int32)
        context = jax.random.normal(k2, (batch, HIDDEN), jnp.float32)
        vad = jax.random.uniform(k3, (batch, 3), jnp.float32)

        probs, intens = emotional_transition_forward(packed, current_emotion,
                                                     context, vad)
        jax.block_until_ready((probs, intens))

        probs_ref, intens_ref = reference_forward(params, current_emotion,
                                                  context, vad)
        assert probs.shape == (batch, NUM_EMOTIONS)
        assert intens.shape == (batch, NUM_EMOTIONS)
        assert jnp.allclose(probs, probs_ref, atol=1e-4, rtol=1e-4)
        assert jnp.allclose(intens, intens_ref, atol=1e-4, rtol=1e-4)

    # TODO(synk): nn.Dropout(0.1) is eval-mode identity here (no in-kernel RNG).
    print("KERNEL_OK")
</pallas_src>

<mosaic_0001>
module attributes {stable_mosaic.version = 11 : i64} {
  func.func @_emotional_kernel(%arg0: i32, %arg1: memref<64x64xf32, #tpu.memory_space<vmem>>, %arg2: memref<560x32xf32, #tpu.memory_space<vmem>>, %arg3: memref<8x512xf32, #tpu.memory_space<vmem>>, %arg4: memref<64x128xf32, #tpu.memory_space<vmem>>) attributes {dimension_semantics = [#tpu.dimension_semantics<parallel>], iteration_bounds = array<i64: 2>, scalar_prefetch = 0 : i64, scratch_operands = 0 : i64, tpu.core_type = #tpu.core_type<tc>, window_params = [{transform_indices = @transform_0, window_bounds = array<i64: 64, 64>}, {pipeline_mode = #tpu.pipeline_mode<synchronous>, transform_indices = @transform_1, window_bounds = array<i64: 560, 32>}, {pipeline_mode = #tpu.pipeline_mode<synchronous>, transform_indices = @transform_2, window_bounds = array<i64: 8, 512>}, {transform_indices = @transform_3, window_bounds = array<i64: 64, 128>}]} {
    %c0 = arith.constant 0 : index
    %c0_0 = arith.constant 0 : index
    %0 = vector.load %arg1[%c0, %c0_0] : memref<64x64xf32, #tpu.memory_space<vmem>>, vector<64x64xf32>
    %c0_1 = arith.constant 0 : index
    %c0_2 = arith.constant 0 : index
    %1 = vector.load %arg2[%c0_1, %c0_2] : memref<560x32xf32, #tpu.memory_space<vmem>>, vector<64x32xf32>
    %cst = arith.constant dense<0.000000e+00> : vector<64x32xf32>
    %2 = tpu.matmul %0, %1, %cst {dimension_numbers = #tpu.dot_dimension_numbers<[1], [0], [0], [1], [0, 0, 1, 1], [], []>} : vector<64x64xf32>, vector<64x32xf32>, vector<64x32xf32> -> vector<64x32xf32>
    %c4 = arith.constant 4 : index
    %c0_3 = arith.constant 0 : index
    %3 = vector.load %arg3[%c4, %c0_3] : memref<8x512xf32, #tpu.memory_space<vmem>>, vector<1x32xf32>
    %4 = vector.broadcast %3 : vector<1x32xf32> to vector<64x32xf32>
    %5 = arith.addf %2, %4 : vector<64x32xf32>
    %cst_4 = arith.constant 0.000000e+00 : f32
    %6 = vector.broadcast %cst_4 : f32 to vector<64x32xf32>
    %7 = arith.maximumf %5, %6 : vector<64x32xf32>
    %c64 = arith.constant 64 : index
    %c0_5 = arith.constant 0 : index
    %8 = vector.load %arg2[%c64, %c0_5] : memref<560x32xf32, #tpu.memory_space<vmem>>, vector<32x32xf32>
    %cst_6 = arith.constant dense<0.000000e+00> : vector<64x32xf32>
    %9 = tpu.matmul %7, %8, %cst_6 {dimension_numbers = #tpu.dot_dimension_numbers<[1], [0], [0], [1], [0, 0, 1, 1], [], []>} : vector<64x32xf32>, vector<32x32xf32>, vector<64x32xf32> -> vector<64x32xf32>
    %c5 = arith.constant 5 : index
    %c0_7 = arith.constant 0 : index
    %10 = vector.load %arg3[%c5, %c0_7] : memref<8x512xf32, #tpu.memory_space<vmem>>, vector<1x32xf32>
    %11 = vector.broadcast %10 : vector<1x32xf32> to vector<64x32xf32>
    %12 = arith.addf %9, %11 : vector<64x32xf32>
    %cst_8 = arith.constant 0.000000e+00 : f32
    %13 = vector.broadcast %cst_8 : f32 to vector<64x32xf32>
    %14 = arith.maximumf %12, %13 : vector<64x32xf32>
    %c96 = arith.constant 96 : index
    %c0_9 = arith.constant 0 : index
    %15 = vector.load %arg2[%c96, %c0_9] : memref<560x32xf32, #tpu.memory_space<vmem>>, vector<32x32xf32>
    %cst_10 = arith.constant dense<0.000000e+00> : vector<64x32xf32>
    %16 = tpu.matmul %14, %15, %cst_10 {dimension_numbers = #tpu.dot_dimension_numbers<[1], [0], [0], [1], [0, 0, 1, 1], [], []>} : vector<64x32xf32>, vector<32x32xf32>, vector<64x32xf32> -> vector<64x32xf32>
    %c6 = arith.constant 6 : index
    %c0_11 = arith.constant 0 : index
    %17 = vector.load %arg3[%c6, %c0_11] : memref<8x512xf32, #tpu.memory_space<vmem>>, vector<1x32xf32>
    %18 = vector.broadcast %17 : vector<1x32xf32> to vector<64x32xf32>
    %19 = arith.addf %16, %18 : vector<64x32xf32>
    %cst_12 = arith.constant dense<0xFF800000> : vector<64xf32>
    %20 = vector.multi_reduction <maximumf>, %19, %cst_12 [1] : vector<64x32xf32> to vector<64xf32>
    %21 = vector.shape_cast %20 : vector<64xf32> to vector<64x1xf32>
    %22 = vector.broadcast %21 : vector<64x1xf32> to vector<64x32xf32>
    %23 = arith.subf %19, %22 : vector<64x32xf32>
    %24 = math.exp %23 : vector<64x32xf32>
    %cst_13 = arith.constant dense<0.000000e+00> : vector<64xf32>
    %25 = vector.multi_reduction <add>, %24, %cst_13 [1] : vector<64x32xf32> to vector<64xf32>
    %26 = vector.shape_cast %25 : vector<64xf32> to vector<64x1xf32>
    %27 = vector.broadcast %26 : vector<64x1xf32> to vector<64x32xf32>
    %28 = arith.divf %24, %27 : vector<64x32xf32>
    %c0_14 = arith.constant 0 : index
    %c59 = arith.constant 59 : index
    %29 = vector.load %arg1[%c0_14, %c59] : memref<64x64xf32, #tpu.memory_space<vmem>>, vector<64x3xf32>
    %c0_15 = arith.constant 0 : index
    %c0_16 = arith.constant 0 : index
    %30 = vector.load %arg3[%c0_15, %c0_16] : memref<8x512xf32, #tpu.memory_space<vmem>>, vector<3x432xf32>
    %cst_17 = arith.constant dense<0.000000e+00> : vector<64x432xf32>
    %31 = tpu.matmul %29, %30, %cst_17 {dimension_numbers = #tpu.dot_dimension_numbers<[1], [0], [0], [1], [0, 0, 1, 1], [], []>} : vector<64x3xf32>, vector<3x432xf32>, vector<64x432xf32> -> vector<64x432xf32>
    %c3 = arith.constant 3 : index
    %c0_18 = arith.constant 0 : index
    %32 = vector.load %arg3[%c3, %c0_18] : memref<8x512xf32, #tpu.memory_space<vmem>>, vector<1x432xf32>
    %33 = vector.broadcast %32 : vector<1x432xf32> to vector<64x432xf32>
    %34 = arith.addf %31, %33 : vector<64x432xf32>
    %cst_19 = arith.constant 0.000000e+00 : f32
    %35 = vector.broadcast %cst_19 : f32 to vector<64x432xf32>
    %36 = arith.maximumf %34, %35 : vector<64x432xf32>
    %c128 = arith.constant 128 : index
    %c0_20 = arith.constant 0 : index
    %37 = vector.load %arg2[%c128, %c0_20] : memref<560x32xf32, #tpu.memory_space<vmem>>, vector<432x32xf32>
    %cst_21 = arith.constant dense<0.000000e+00> : vector<64x32xf32>
    %38 = tpu.matmul %36, %37, %cst_21 {dimension_numbers = #tpu.dot_dimension_numbers<[1], [0], [0], [1], [0, 0, 1, 1], [], []>} : vector<64x432xf32>, vector<432x32xf32>, vector<64x32xf32> -> vector<64x32xf32>
    %c7 = arith.constant 7 : index
    %c0_22 = arith.constant 0 : index
    %39 = vector.load %arg3[%c7, %c0_22] : memref<8x512xf32, #tpu.memory_space<vmem>>, vector<1x32xf32>
    %40 = vector.broadcast %39 : vector<1x32xf32> to vector<64x32xf32>
    %41 = arith.addf %38, %40 : vector<64x32xf32>
    %42 = arith.negf %41 : vector<64x32xf32>
    %43 = math.exp %42 : vector<64x32xf32>
    %cst_23 = arith.constant 1.000000e+00 : f32
    %44 = vector.broadcast %cst_23 : f32 to vector<64x32xf32>
    %45 = arith.addf %44, %43 : vector<64x32xf32>
    %46 = arith.divf %44, %45 : vector<64x32xf32>
    %c0_24 = arith.constant 0 : index
    %c0_25 = arith.constant 0 : index
    %47 = vector.load %arg4[%c0_24, %c0_25] : memref<64x128xf32, #tpu.memory_space<vmem>>, vector<64x32xf32>
    tpu.vector_store %arg4[%c0_24, %c0_25], %28 {strides = array<i32>} : memref<64x128xf32, #tpu.memory_space<vmem>>, vector<64x32xf32>,
    %c0_26 = arith.constant 0 : index
    %c32 = arith.constant 32 : index
    %48 = vector.load %arg4[%c0_26, %c32] : memref<64x128xf32, #tpu.memory_space<vmem>>, vector<64x32xf32>
    tpu.vector_store %arg4[%c0_26, %c32], %46 {strides = array<i32>} : memref<64x128xf32, #tpu.memory_space<vmem>>, vector<64x32xf32>,
    %cst_27 = arith.constant 0.000000e+00 : f32
    %49 = vector.broadcast %cst_27 : f32 to vector<64x64xf32>
    %c0_28 = arith.constant 0 : index
    %c64_29 = arith.constant 64 : index
    %50 = vector.load %arg4[%c0_28, %c64_29] : memref<64x128xf32, #tpu.memory_space<vmem>>, vector<64x64xf32>
    tpu.vector_store %arg4[%c0_28, %c64_29], %49 {strides = array<i32>} : memref<64x128xf32, #tpu.memory_space<vmem>>, vector<64x64xf32>,
    return
  }
  func.func @transform_0(%arg0: i32) -> (i32, i32) {
    %c0_i32 = arith.constant 0 : i32
    %c0_i32_0 = arith.constant 0 : i32
    return %arg0, %c0_i32 : i32, i32
  }
  func.func @transform_1(%arg0: i32) -> (i32, i32) {
    %c0_i32 = arith.constant 0 : i32
    %c0_i32_0 = arith.constant 0 : i32
    %c0_i32_1 = arith.constant 0 : i32
    return %c0_i32, %c0_i32_0 : i32, i32
  }
  func.func @transform_2(%arg0: i32) -> (i32, i32) {
    %c0_i32 = arith.constant 0 : i32
    %c0_i32_0 = arith.constant 0 : i32
    %c0_i32_1 = arith.constant 0 : i32
    return %c0_i32, %c0_i32_0 : i32, i32
  }
  func.func @transform_3(%arg0: i32) -> (i32, i32) {
    %c0_i32 = arith.constant 0 : i32
    %c0_i32_0 = arith.constant 0 : i32
    return %arg0, %c0_i32 : i32, i32
  }
}

</mosaic_0001>

<bundles_post_ra>
// kernel: _forward.1
= control target key start
LH: loop header
LB: loop body
LE: loop exit
PB: predicated region body
PF: predicated region fallthrough
CT: control target
= control target key end

     0   :  { %s1827_s12 = smov 0   ;;  %s2414_s0 = inlined_call_operand.vmem [shape: f32[128,64], index: 0, kind: input, shape index: {}]   ;;  %s2415_s1 = inlined_call_operand.vmem [shape: f32[560,32], index: 1, kind: input, shape index: {}]   ;;  %s2416_s2 = inlined_call_operand.vmem [shape: f32[8,512], index: 2, kind: input, shape index: {}]   ;;  %s2417_s3 = inlined_call_operand.vmem [shape: f32[128,128], index: 3, kind: output, shape index: {}]  }
   0x1 LB: > { %s1477_s13 = sadd.s32 4294967295, %s1802_s12   ;;  %p1481_p0 = scmp.ge.s32.totalorder %s1802_s12, 1  ;;  %s1802_s12 = sphi %s1827_s12, %s13_s12  }
   0x2   : > { %p138_p1 = scmp.lt.s32.totalorder %s1802_s12, 3 }
   0x4   : > { %p139_p2 = pnand %p1481_p0, %p138_p1 }
   0x5   : > { %s1482_s18 = sshll.u32 (!%p139_p2), %s1477_s13, 3  ;;  %s1804_s20 = smov (!%p139_p2), 69  }
   0x6   : > { %142 = sbr.rel (%p139_p2) target bundleno = 1017 (0x3f9), region = 32  ;;  %p163_p3 = scmp.lt.s32.totalorder (!%p139_p2), %s1482_s18, 15 }
   0x7   : > { %s1806_s7 = smov (!%p139_p2), 32  }
   0xb   : > { %v189_v0 = vld [vmem:[%s2415_s1 + $0x38] sm:$0xff]  ;;  %v188_v1 = vld [vmem:[%s2415_s1 + $0x30] sm:$0xff]  ;;  %v187_v2 = vld [vmem:[%s2415_s1 + $0x28] sm:$0xff]  ;;  %s2419_s18 = smov (!%p163_p3, %s1482_s18), 15  ;;  %vm191_vm0 = vcmask 523264   ;;  %vm334_vm1 = vcmask 261120  }
   0xc   : > { %1645 = vmatprep.subr.mxu0 %v189_v0  ;;  %v332_v3 = vld [vmem:[%s2415_s1 + $0x58] sm:$0xff]  ;;  %v186_v4 = vld [vmem:[%s2415_s1 + $0x20] sm:$0xff]  ;;  %v331_v5 = vld [vmem:[%s2415_s1 + $0x50] sm:$0xff]  ;;  %s1483_s27 = sshll.u32 %s2419_s18, 3  ;;  %vm754_vm2 = vcmask 1042432   ;;  %v1805_v53 = vmov 0.0  }
   0xd   : > { %1646 = vmatpush3.msra.mxu0 %v189_v0  ;;  %1713 = vmatprep.subr.mxu1 %v332_v3  ;;  %v185_v6 = vld [vmem:[%s2415_s1 + $0x18] sm:$0xff]  ;;  %s1864_s5 = scalar_lea.vmem %s2414_s0, %s1483_s27  ;;  %v330_v7 = vld [vmem:[%s2415_s1 + $0x48] sm:$0xff]  ;;  %v184_v9 = vld [vmem:[%s2415_s1 + $0x10] sm:$0xff]  ;;  %vm737_vm3 = vcmask 23552   ;;  %vm1080_vm4 = vcmask 392192   ;;  %s2345_s10 = scalar_lea.vmem %s2417_s3, %s1483_s27  ;;  %vm1403_vm5 = vcmask 523520  }
   0xe   : > { %1647 = vmatprep.subr.mxu0 %v188_v1  ;;  %1717 = vmatpush3.msra.mxu1 %v332_v3  ;;  %v174_v8 = vld [vmem:[%s1864_s5] sm:$0xff]  ;;  %v183_v10 = vld [vmem:[%s2415_s1 + $0x8] sm:$0xff]  ;;  %v176_v13 = vld [vmem:[%s1864_s5 + $0x10] sm:$0xff]  ;;  %vm1412_vm6 = vcmask 1048064  }
   0xf   : > { %1648 = vmatpush3.msra.mxu0 %v188_v1  ;;  %1714 = vmatprep.subr.mxu1 %v331_v5  ;;  %v182_v11 = vld [vmem:[%s2415_s1] sm:$0xff]  ;;  %v175_v12 = vld [vmem:[%s1864_s5 + $0x8] sm:$0xff]  ;;  %v177_v14 = vld [vmem:[%s1864_s5 + $0x18] sm:$0xff] }
  0x10   : > { %1649 = vmatprep.subr.mxu0 %v187_v2  ;;  %1718 = vmatpush3.msra.mxu1 %v331_v5  ;;  %v178_v15 = vld [vmem:[%s1864_s5 + $0x20] sm:$0xff]  ;;  %v179_v16 = vld [vmem:[%s1864_s5 + $0x28] sm:$0xff]  ;;  %v180_v17 = vld [vmem:[%s1864_s5 + $0x30] sm:$0xff] }
  0x11   : > { %1650 = vmatpush3.msra.mxu0 %v187_v2  ;;  %1715 = vmatprep.subr.mxu1 %v330_v7  ;;  %v181_v18 = vld [vmem:[%s1864_s5 + $0x38] sm:$0xff]  ;;  %v329_v19 = vld [vmem:[%s2415_s1 + $0x40] sm:$0xff]  ;;  %v474_v46 = vld [vmem:[%s2415_s1 + $0x70] sm:$0xff] }
  0x12   : > { %1651 = vmatprep.subr.mxu0 %v186_v4  ;;  %1661 = vmatprep.mubr.msk.f32.mxu0 %vm191_vm0, %v174_v8  ;;  %v475_v20 = vld [vmem:[%s2415_s1 + $0x78] sm:$0xff]  ;;  %v190_v21 = vld [vmem:[%s2416_s2 + $0x4] ss:$0 sm:$0xff]  ;;  %v473_v47 = vld [vmem:[%s2415_s1 + $0x68] sm:$0xff] }
  0x13   : > { %1652 = vmatpush3.msra.mxu0 %v186_v4  ;;  %1719 = vmatpush3.msra.mxu1 %v330_v7  ;;  %v472_v48 = vld [vmem:[%s2415_s1 + $0x60] sm:$0xff]  ;;  %v697_v49 = vld [vmem:[%s2416_s2 + $0x18] sm:$0x7]  ;;  %v695_v50 = vld [vmem:[%s2416_s2 + $0x8] sm:$0x7] }
  0x14   : > { %1653 = vmatprep.subr.mxu0 %v185_v6  ;;  %1716 = vmatprep.subr.mxu1 %v329_v19  ;;  %v694_v51 = vld [vmem:[%s2416_s2] sm:$0x7]  ;;  %v1056_v61 = vld [vmem:[%s2415_s1 + $0x178] sm:$0xff]  ;;  %v1055_v63 = vld [vmem:[%s2415_s1 + $0x170] sm:$0xff] }
  0x15   : > { %1654 = vmatpush3.msra.mxu0 %v185_v6  ;;  %1720 = vmatpush3.msra.mxu1 %v329_v19  ;;  %v1040_v62 = vld [vmem:[%s2415_s1 + $0xf8] sm:$0xff]  ;;  %v1039_v0 = vld [vmem:[%s2415_s1 + $0xf0] sm:$0xff]  ;;  %v1054_v1 = vld [vmem:[%s2415_s1 + $0x168] sm:$0xff] }
  0x16   : > { %1655 = vmatprep.subr.mxu0 %v184_v9  ;;  %721 = vrot.lane.b32.xlu0 %v174_v8, %s1804_s20  ;;  %v1038_v2 = vld [vmem:[%s2415_s1 + $0xe8] sm:$0xff]  ;;  %v1037_v4 = vld [vmem:[%s2415_s1 + $0xe0] sm:$0xff]  ;;  %v1036_v6 = vld [vmem:[%s2415_s1 + $0xd8] sm:$0xff] }
  0x17   : > { %1656 = vmatpush3.msra.mxu0 %v184_v9  ;;  %725 = vrot.lane.b32.xlu1 %v176_v13, %s1804_s20  ;;  %v1035_v8 = vld [vmem:[%s2415_s1 + $0xd0] sm:$0xff]  ;;  %v1050_v9 = vld [vmem:[%s2415_s1 + $0x148] sm:$0xff] }
  0x18   : > { %1657 = vmatprep.subr.mxu0 %v183_v10  ;;  %1693 = vmatprep.subr.mxu1 %v475_v20 }
  0x19   : > { %1658 = vmatpush3.msra.mxu0 %v183_v10  ;;  %v1034_v10 = vld [vmem:[%s2415_s1 + $0xc8] sm:$0xff] }
  0x1a   : > { %1659 = vmatprep.subr.mxu0 %v182_v11  ;;  %723 = vrot.lane.b32.xlu0 %v175_v12, %s1804_s20 }
  0x1b   : > { %1660 = vmatpush3.msra.mxu0 %v182_v11  ;;  %727 = vrot.lane.b32.xlu1 %v177_v14, %s1804_s20  ;;  %v1049_v11 = vld [vmem:[%s2415_s1 + $0x140] sm:$0xff] }
  0x1c   : > { %1662 = vmatmul.mubr.msk.f32.vlgmr.msra.gmra.mxu0 %vm191_vm0, %v175_v12  ;;  %1673 = vmatprep.subr.mxu0 %v332_v3  ;;  %v1033_v12 = vld [vmem:[%s2415_s1 + $0xc0] sm:$0xff] }
  0x1d   : > { %1664 = vmatprep.mubr.msk.f32.mxu0 %vm191_vm0, %v176_v13  ;;  %1674 = vmatpush3.msra.mxu0 %v332_v3  ;;  %v1053_v3 = vld [vmem:[%s2415_s1 + $0x160] sm:$0xff]  ;;  %v1048_v13 = vld [vmem:[%s2415_s1 + $0x138] sm:$0xff] }
  0x1e   : > { %1675 = vmatprep.subr.mxu0 %v331_v5  ;;  %729 = vrot.lane.b32.xlu0 %v178_v15, %s1804_s20 }
  0x1f   : > { %1676 = vmatpush3.msra.mxu0 %v331_v5  ;;  %731 = vrot.lane.b32.xlu1 %v179_v16, %s1804_s20  ;;  %v1052_v5 = vld [vmem:[%s2415_s1 + $0x158] sm:$0xff] }
  0x20   : > { %1665 = vmatmul.mubr.msk.f32.gmra.mxu0 %vm191_vm0, %v177_v14  ;;  %1677 = vmatprep.subr.mxu0 %v330_v7  ;;  %v1032_v14 = vld [vmem:[%s2415_s1 + $0xb8] sm:$0xff] }
  0x21   : > { %1667 = vmatprep.mubr.msk.f32.mxu0 %vm191_vm0, %v178_v15  ;;  %1678 = vmatpush3.msra.mxu0 %v330_v7  ;;  %v1051_v7 = vld [vmem:[%s2415_s1 + $0x150] sm:$0xff] }
  0x22   : > { %1679 = vmatprep.subr.mxu0 %v329_v19  ;;  %733 = vrot.lane.b32.xlu0 %v180_v17, %s1804_s20  ;;  %v1047_v15 = vld [vmem:[%s2415_s1 + $0x130] sm:$0xff] }
  0x23   : > { %1680 = vmatpush3.msra.mxu0 %v329_v19  ;;  %735 = vrot.lane.b32.xlu1 %v181_v18, %s1804_s20 }
  0x24   : > { %1668 = vmatmul.mubr.msk.f32.gmra.mxu0 %vm191_vm0, %v179_v16  ;;  %1511 = vmatprep.subr.msk.mxu0 %vm754_vm2, %v695_v50  ;;  %v333_v16 = vld [vmem:[%s2416_s2 + $0x5] ss:$0 sm:$0xff]  ;;  %v1064_v50 = vld [vmem:[%s2415_s1 + $0x1b8] sm:$0xff] }
  0x25   : > { %1670 = vmatprep.mubr.msk.f32.mxu0 %vm191_vm0, %v180_v17 }
  0x28   : > { %1671 = vmatmul.mubr.msk.f32.gmra.mxu0 %vm191_vm0, %v181_v18 }
  0x88   : > { %v1932_v52 = vpop.permute.xlu0 %721 }
  0x89   : > { %v1943_v55 = vpop.permute.xlu1 %725 }
  0x8c   : > { %v1938_v54 = vpop.permute.xlu0 %723 }
  0x8d   : > { %v1948_v56 = vpop.permute.xlu1 %727 }
  0x90   : > { %v1952_v57 = vpop.permute.xlu0 %729 }
  0x91   : > { %v1957_v58 = vpop.permute.xlu1 %731 }
  0x94   : > { %v1962_v59 = vpop.permute.xlu0 %733 }
  0x95   : > { %v1967_v60 = vpop.permute.xlu1 %735 }
  0xdc   : > { %v1663_v22 = vpop.f32.mrf.mxu0 }
  0xdd   : > { %v288_v23 = vadd.f32 %v1663_v22, %v190_v21 }
  0xde   : > { %v282_v24 = vpop.f32.mrf.mxu0 }
  0xdf   : > { %v283_v25 = vadd.f32 %v282_v24, %v190_v21  ;;  %v322_v28 = vmax.f32 %v288_v23, 0.0 }
  0xe0   : > { %v1666_v26 = vpop.f32.mrf.mxu0 }
  0xe1   : > { %v321_v27 = vmax.f32 %v283_v25, 0.0  ;;  %v298_v29 = vadd.f32 %v1666_v26, %v190_v21  ;;  %v696_v26 = vld [vmem:[%s2416_s2 + $0x10] sm:$0x7] }
  0xe2   : > { %v292_v30 = vpop.f32.mrf.mxu0 }
  0xe3   : > { %v293_v31 = vadd.f32 %v292_v30, %v190_v21  ;;  %1681 = vmatprep.mubr.msk.f32.mxu0 %vm334_vm1, %v321_v27  ;;  %v324_v34 = vmax.f32 %v298_v29, 0.0 }
  0xe4   : > { %v1669_v32 = vpop.f32.mrf.mxu0  ;;  %1682 = vmatmul.mubr.msk.f32.vlgmr.msra.gmra.mxu0 %vm334_vm1, %v322_v28 }
  0xe5   : > { %v323_v33 = vmax.f32 %v293_v31, 0.0  ;;  %v308_v35 = vadd.f32 %v1669_v32, %v190_v21  ;;  %1512 = vmatpush1.msk.msra.mxu0 %vm754_vm2, %v694_v51  ;;  %v1063_v51 = vld [vmem:[%s2415_s1 + $0x1b0] sm:$0xff] }
  0xe6   : > { %v302_v36 = vpop.f32.mrf.mxu0  ;;  %1589 = vmatprep.subr.mxu0 %v1056_v61  ;;  %v1029_v61 = vld [vmem:[%s2415_s1 + $0xa0] sm:$0xff] }
  0xe7   : > { %v303_v37 = vadd.f32 %v302_v36, %v190_v21  ;;  %1684 = vmatprep.mubr.msk.f32.mxu0 %vm334_vm1, %v323_v33  ;;  %v326_v40 = vmax.f32 %v308_v35, 0.0 }
  0xe8   : > { %v1672_v38 = vpop.f32.mrf.mxu0  ;;  %1685 = vmatmul.mubr.msk.f32.gmra.mxu0 %vm334_vm1, %v324_v34 }
  0xe9   : > { %v325_v39 = vmax.f32 %v303_v37, 0.0  ;;  %v318_v41 = vadd.f32 %v1672_v38, %v190_v21  ;;  %831 = vmatprep.mubr.f32.mxu0 %v1805_v53 }
  0xea   : > { %v312_v42 = vpop.f32.mrf.mxu0 }
  0xeb   : > { %v313_v43 = vadd.f32 %v312_v42, %v190_v21  ;;  %1687 = vmatprep.mubr.msk.f32.mxu1 %vm334_vm1, %v325_v39  ;;  %v328_v45 = vmax.f32 %v318_v41, 0.0  ;;  %v1072_v42 = vld [vmem:[%s2415_s1 + $0x1f8] sm:$0xff] }
  0xec   : > { %1688 = vmatmul.mubr.msk.f32.vlgmr.msra.gmra.mxu1 %vm334_vm1, %v326_v40  ;;  %1513 = vmatmul.mubr.msk.f32.vlgmr.msra.gmra.mxu0 %vm737_vm3, %v1932_v52 }
  0xed   : > { %v327_v44 = vmax.f32 %v313_v43, 0.0  ;;  %1694 = vmatpush3.msra.mxu1 %v475_v20  ;;  %837 = vmatprep.mubr.f32.mxu0 %v1805_v53  ;;  %v1071_v43 = vld [vmem:[%s2415_s1 + $0x1f0] sm:$0xff] }
  0xee   : > { %1695 = vmatprep.subr.mxu1 %v474_v46  ;;  %1590 = vmatpush3.msra.mxu0 %v1040_v62  ;;  %v1044_v62 = vld [vmem:[%s2415_s1 + $0x118] sm:$0xff] }
  0xef   : > { %1690 = vmatprep.mubr.msk.f32.mxu1 %vm334_vm1, %v327_v44  ;;  %1696 = vmatpush3.msra.mxu1 %v474_v46  ;;  %v1070_v44 = vld [vmem:[%s2415_s1 + $0x1e8] sm:$0xff]  ;;  %v1068_v46 = vld [vmem:[%s2415_s1 + $0x1d8] sm:$0xff] }
  0xf0   : > { %1691 = vmatmul.mubr.msk.f32.gmra.mxu1 %vm334_vm1, %v328_v45  ;;  %1697 = vmatprep.subr.mxu1 %v473_v47  ;;  %v1069_v45 = vld [vmem:[%s2415_s1 + $0x1e0] sm:$0xff] }
  0xf1   : > { %1698 = vmatpush3.msra.mxu1 %v473_v47  ;;  %1514 = vmatmul.mubr.msk.f32.gmra.mxu0 %vm737_vm3, %v1938_v54  ;;  %v1067_v47 = vld [vmem:[%s2415_s1 + $0x1d0] sm:$0xff] }
  0xf2   : > { %1699 = vmatprep.subr.mxu1 %v472_v48  ;;  %843 = vmatprep.mubr.f32.mxu0 %v1805_v53 }
  0xf3   : > { %1700 = vmatpush3.msra.mxu1 %v472_v48  ;;  %1591 = vmatprep.subr.mxu0 %v1055_v63  ;;  %v1066_v48 = vld [vmem:[%s2415_s1 + $0x1c8] sm:$0xff]  ;;  %v1060_v63 = vld [vmem:[%s2415_s1 + $0x198] sm:$0xff] }
  0xf4   : > { %1521 = vmatprep.subr.msk.mxu1 %vm754_vm2, %v697_v49  ;;  %1592 = vmatpush3.msra.mxu0 %v1039_v0  ;;  %v1065_v49 = vld [vmem:[%s2415_s1 + $0x1c0] sm:$0xff] }
  0xf5   : > { %1515 = vmatmul.mubr.msk.f32.gmra.mxu0 %vm737_vm3, %v1943_v55  ;;  %1593 = vmatprep.subr.mxu0 %v1054_v1  ;;  %v1510_v1 = vld [vmem:[%s2416_s2 + $0x3] ss:$8 sm:$0xf] }
  0xf6   : > { %849 = vmatprep.mubr.f32.mxu0 %v1805_v53  ;;  %1594 = vmatpush3.msra.mxu0 %v1038_v2 }
  0xf7   : > { %1595 = vmatprep.subr.mxu0 %v1053_v3 }
  0xf8   : > { %1596 = vmatpush3.msra.mxu0 %v1037_v4  ;;  %v1028_v4 = vld [vmem:[%s2415_s1 + $0x98] sm:$0xff] }
  0xf9   : > { %1516 = vmatmul.mubr.msk.f32.gmra.mxu0 %vm737_vm3, %v1948_v56  ;;  %1597 = vmatprep.subr.mxu0 %v1052_v5 }
  0xfa   : > { %855 = vmatprep.mubr.f32.mxu0 %v1805_v53  ;;  %1598 = vmatpush3.msra.mxu0 %v1036_v6  ;;  %v1043_v6 = vld [vmem:[%s2415_s1 + $0x110] sm:$0xff] }
  0xfb   : > { %1599 = vmatprep.subr.mxu0 %v1051_v7  ;;  %v1059_v7 = vld [vmem:[%s2415_s1 + $0x190] sm:$0xff] }
  0xfc   : > { %1600 = vmatpush3.msra.mxu0 %v1035_v8 }
  0xfd   : > { %1517 = vmatmul.mubr.msk.f32.gmra.mxu0 %vm737_vm3, %v1952_v57  ;;  %1601 = vmatprep.subr.mxu0 %v1050_v9 }
  0xfe   : > { %861 = vmatprep.mubr.f32.mxu0 %v1805_v53  ;;  %1602 = vmatpush3.msra.mxu0 %v1034_v10  ;;  %v1027_v10 = vld [vmem:[%s2415_s1 + $0x90] sm:$0xff] }
  0xff   : > { %1603 = vmatprep.subr.mxu0 %v1049_v11 }
 0x100   : > { %1604 = vmatpush3.msra.mxu0 %v1033_v12  ;;  %v1042_v12 = vld [vmem:[%s2415_s1 + $0x108] sm:$0xff] }
 0x101   : > { %1518 = vmatmul.mubr.msk.f32.gmra.mxu0 %vm737_vm3, %v1957_v58  ;;  %1605 = vmatprep.subr.mxu0 %v1048_v13  ;;  %v1058_v13 = vld [vmem:[%s2415_s1 + $0x188] sm:$0xff] }
 0x102   : > { %867 = vmatprep.mubr.f32.mxu0 %v1805_v53  ;;  %1606 = vmatpush3.msra.mxu0 %v1032_v14 }
 0x103   : > { %1607 = vmatprep.subr.mxu0 %v1047_v15 }
 0x105   : > { %1519 = vmatmul.mubr.msk.f32.gmra.mxu0 %vm737_vm3, %v1962_v59 }
 0x106   : > { %873 = vmatprep.mubr.f32.mxu0 %v1805_v53 }
 0x109   : > { %1520 = vmatmul.mubr.msk.f32.gmra.mxu0 %vm737_vm3, %v1967_v60 }
 0x1a4   : > { %v1683_v17 = vpop.f32.mrf.mxu0 }
 0x1a5   : > { %v431_v18 = vadd.f32 %v1683_v17, %v333_v16 }
 0x1a6   : > { %v425_v19 = vpop.f32.mrf.mxu0 }
 0x1a7   : > { %v426_v20 = vadd.f32 %v425_v19, %v333_v16  ;;  %v465_v23 = vmax.f32 %v431_v18, 0.0  ;;  %v1041_v19 = vld [vmem:[%s2415_s1 + $0x100] sm:$0xff] }
 0x1a8   : > { %v1686_v21 = vpop.f32.mrf.mxu0 }
 0x1a9   : > { %v464_v22 = vmax.f32 %v426_v20, 0.0  ;;  %v441_v24 = vadd.f32 %v1686_v21, %v333_v16  ;;  %v1057_v20 = vld [vmem:[%s2415_s1 + $0x180] sm:$0xff] }
 0x1aa   : > { %v435_v25 = vpop.f32.mrf.mxu0 }
 0x1ab   : > { %v436_v27 = vadd.f32 %v435_v25, %v333_v16  ;;  %1701 = vmatprep.mubr.msk.f32.mxu1 %vm334_vm1, %v464_v22  ;;  %v467_v30 = vmax.f32 %v441_v24, 0.0  ;;  %v1078_v25 = vld [vmem:[%s2415_s1 + $0x228] sm:$0xff] }
 0x1ac   : > { %v1689_v28 = vpop.f32.mrf.mxu1  ;;  %1702 = vmatmul.mubr.msk.f32.vlgmr.msra.gmra.mxu1 %vm334_vm1, %v465_v23  ;;  %v833_v3 = vpop.f32.mrf.mxu0  ;;  %v1025_v23 = vld [vmem:[%s2415_s1 + $0x80] sm:$0xff] }
 0x1ad   : > { %v466_v29 = vmax.f32 %v436_v27, 0.0  ;;  %1522 = vmatpush1.msk.msra.mxu1 %vm754_vm2, %v696_v26  ;;  %v451_v31 = vadd.f32 %v1689_v28, %v333_v16 }
 0x1ae   : > { %v445_v32 = vpop.f32.mrf.mxu1  ;;  %1210 = vmatprep.subr.mxu1 %v1805_v53  ;;  %v835_v9 = vpop.f32.mrf.mxu0 }
 0x1af   : > { %v446_v33 = vadd.f32 %v445_v32, %v333_v16  ;;  %1704 = vmatprep.mubr.msk.f32.mxu1 %vm334_vm1, %v466_v29  ;;  %v469_v36 = vmax.f32 %v451_v31, 0.0  ;;  %v1077_v31 = vld [vmem:[%s2415_s1 + $0x220] sm:$0xff] }
 0x1b0   : > { %v1692_v34 = vpop.f32.mrf.mxu1  ;;  %1705 = vmatmul.mubr.msk.f32.gmra.mxu1 %vm334_vm1, %v467_v30 }
 0x1b1   : > { %v468_v35 = vmax.f32 %v446_v33, 0.0  ;;  %v461_v37 = vadd.f32 %v1692_v34, %v333_v16  ;;  %v839_v15 = vpop.f32.mrf.mxu0 }
 0x1b2   : > { %v455_v38 = vpop.f32.mrf.mxu1 }
 0x1b3   : > { %v456_v39 = vadd.f32 %v455_v38, %v333_v16  ;;  %1707 = vmatprep.mubr.msk.f32.mxu1 %vm334_vm1, %v468_v35  ;;  %v471_v41 = vmax.f32 %v461_v37, 0.0  ;;  %v1026_v16 = vld [vmem:[%s2415_s1 + $0x88] sm:$0xff]  ;;  %v841_v22 = vpop.f32.mrf.mxu0 }
 0x1b4   : > { %1708 = vmatmul.mubr.msk.f32.gmra.mxu1 %vm334_vm1, %v469_v36  ;;  %v1076_v36 = vld [vmem:[%s2415_s1 + $0x218] sm:$0xff] }
 0x1b5   : > { %v470_v40 = vmax.f32 %v456_v39, 0.0  ;;  %v845_v27 = vpop.f32.mrf.mxu0 }
 0x1b7   : > { %1710 = vmatprep.mubr.msk.f32.mxu1 %vm334_vm1, %v470_v40  ;;  %v847_v32 = vpop.f32.mrf.mxu0 }
 0x1b8   : > { %1711 = vmatmul.mubr.msk.f32.gmra.mxu1 %vm334_vm1, %v471_v41  ;;  %v1075_v41 = vld [vmem:[%s2415_s1 + $0x210] sm:$0xff] }
 0x1b9   : > { %944 = vmatprep.mubr.f32.mxu1 %v1805_v53  ;;  %v851_v38 = vpop.f32.mrf.mxu0 }
 0x1bc   : > { %1523 = vmatmul.mubr.msk.f32.vlgmr.msra.gmra.mxu1 %vm737_vm3, %v1932_v52  ;;  %v1031_v52 = vld [vmem:[%s2415_s1 + $0xb0] sm:$0xff] }
 0x1bd   : > { %950 = vmatprep.mubr.f32.mxu1 %v1805_v53  ;;  %1211 = vmatpush1.msra.mxu1 %v1072_v42 }
 0x1be   : > { %1212 = vmatprep.subr.mxu1 %v1805_v53  ;;  %1608 = vmatpush3.msra.mxu0 %v1031_v52 }
 0x1bf   : > { %1213 = vmatpush1.msra.mxu1 %v1071_v43  ;;  %v853_v43 = vpop.f32.mrf.mxu0 }
 0x1c0   : > { %1524 = vmatmul.mubr.msk.f32.gmra.mxu1 %vm737_vm3, %v1938_v54  ;;  %1214 = vmatprep.subr.mxu1 %v1805_v53  ;;  %v1046_v54 = vld [vmem:[%s2415_s1 + $0x128] sm:$0xff] }
 0x1c1   : > { %956 = vmatprep.mubr.f32.mxu1 %v1805_v53  ;;  %1215 = vmatpush1.msra.mxu1 %v1070_v44 }
 0x1c2   : > { %1216 = vmatprep.subr.mxu1 %v1805_v53  ;;  %1609 = vmatprep.subr.mxu0 %v1046_v54 }
 0x1c3   : > { %1217 = vmatpush1.msra.mxu1 %v1069_v45  ;;  %v1074_v45 = vld [vmem:[%s2415_s1 + $0x208] sm:$0xff] }
 0x1c4   : > { %1525 = vmatmul.mubr.msk.f32.gmra.mxu1 %vm737_vm3, %v1943_v55  ;;  %1218 = vmatprep.subr.mxu1 %v1805_v53  ;;  %v1062_v55 = vld [vmem:[%s2415_s1 + $0x1a8] sm:$0xff] }
 0x1c5   : > { %962 = vmatprep.mubr.f32.mxu1 %v1805_v53  ;;  %1219 = vmatpush1.msra.mxu1 %v1068_v46 }
 0x1c6   : > { %1220 = vmatprep.subr.mxu1 %v1805_v53 }
 0x1c7   : > { %1221 = vmatpush1.msra.mxu1 %v1067_v47  ;;  %v857_v47 = vpop.f32.mrf.mxu0 }
 0x1c8   : > { %1526 = vmatmul.mubr.msk.f32.gmra.mxu1 %vm737_vm3, %v1948_v56  ;;  %1222 = vmatprep.subr.mxu1 %v1805_v53  ;;  %v701_v56 = vlaneseq }
 0x1c9   : > { %968 = vmatprep.mubr.f32.mxu1 %v1805_v53  ;;  %1223 = vmatpush1.msra.mxu1 %v1066_v48 }
 0x1ca   : > { %1224 = vmatprep.subr.mxu1 %v1805_v53 }
 0x1cb   : > { %1225 = vmatpush1.msra.mxu1 %v1065_v49  ;;  %v1073_v49 = vld [vmem:[%s2415_s1 + $0x200] sm:$0xff] }
 0x1cc   : > { %1527 = vmatmul.mubr.msk.f32.gmra.mxu1 %vm737_vm3, %v1952_v57  ;;  %1226 = vmatprep.subr.mxu1 %v1805_v53  ;;  %v1030_v57 = vld [vmem:[%s2415_s1 + $0xa8] sm:$0xff] }
 0x1cd   : > { %974 = vmatprep.mubr.f32.mxu1 %v1805_v53  ;;  %1227 = vmatpush1.msra.mxu1 %v1064_v50 }
 0x1ce   : > { %1228 = vmatprep.subr.mxu1 %v1805_v53  ;;  %1610 = vmatpush3.msra.mxu0 %v1030_v57 }
 0x1cf   : > { %1229 = vmatpush1.msra.mxu1 %v1063_v51  ;;  %v859_v51 = vpop.f32.mrf.mxu0 }
 0x1d0   : > { %1528 = vmatmul.mubr.msk.f32.gmra.mxu1 %vm737_vm3, %v1957_v58  ;;  %1230 = vmatprep.subr.mxu1 %v1805_v53  ;;  %v1045_v58 = vld [vmem:[%s2415_s1 + $0x120] sm:$0xff] }
 0x1d1   : > { %980 = vmatprep.mubr.f32.mxu1 %v1805_v53  ;;  %1231 = vmatpush1.msra.mxu1 %v1062_v55  ;;  %v863_v55 = vpop.f32.mrf.mxu0 }
 0x1d2   : > { %1232 = vmatprep.subr.mxu1 %v1805_v53  ;;  %1611 = vmatprep.subr.mxu0 %v1045_v58 }
 0x1d3   : > { %1612 = vmatpush3.msra.mxu0 %v1029_v61  ;;  %v865_v58 = vpop.f32.mrf.mxu0 }
 0x1d4   : > { %1529 = vmatmul.mubr.msk.f32.gmra.mxu1 %vm737_vm3, %v1962_v59  ;;  %v1061_v59 = vld [vmem:[%s2415_s1 + $0x1a0] sm:$0xff]  ;;  %1613 = vmatprep.subr.mxu0 %v1044_v62 }
 0x1d5   : > { %986 = vmatprep.mubr.f32.mxu1 %v1805_v53  ;;  %1233 = vmatpush1.msra.mxu1 %v1061_v59  ;;  %v869_v61 = vpop.f32.mrf.mxu0 }
 0x1d6   : > { %1234 = vmatprep.subr.mxu1 %v1805_v53  ;;  %1614 = vmatpush3.msra.mxu0 %v1028_v4 }
 0x1d7   : > { %1235 = vmatpush1.msra.mxu1 %v1060_v63  ;;  %1615 = vmatprep.subr.mxu0 %v1043_v6 }
 0x1d8   : > { %1530 = vmatmul.mubr.msk.f32.gmra.mxu1 %vm737_vm3, %v1967_v60  ;;  %v2128_v60 = vshrl.u32 %v701_v56, 7  ;;  %1236 = vmatprep.subr.mxu1 %v1805_v53 }
 0x1d9   : > { %1237 = vmatpush1.msra.mxu1 %v1059_v7  ;;  %1616 = vmatpush3.msra.mxu0 %v1027_v10 }
 0x1da   : > { %v707_v0 = vsub.s32 1, %v2128_v60  ;;  %v703_v2 = vsub.s32 0, %v2128_v60  ;;  %1238 = vmatprep.subr.mxu1 %v1805_v53  ;;  %1617 = vmatprep.subr.mxu0 %v1042_v12  ;;  %v711_v28 = vsub.s32 2, %v2128_v60  ;;  %v715_v34 = vsub.s32 3, %v2128_v60  ;;  %v476_v12 = vld [vmem:[%s2416_s2 + $0x6] ss:$0 sm:$0xff] }
 0x1db   : > { %1239 = vmatpush1.msra.mxu1 %v1058_v13  ;;  %1618 = vmatpush3.msra.mxu0 %v1026_v16 }
 0x1dc   : > { %v2149_v5 = vrot.slane %v1510_v1, %v707_v0  ;;  %v2157_v8 = vrot.slane %v1510_v1, %v703_v2  ;;  %1240 = vmatprep.subr.mxu1 %v1805_v53  ;;  %1619 = vmatprep.subr.mxu0 %v1041_v19  ;;  %v2196_v33 = vrot.slane %v1510_v1, %v711_v28  ;;  %v871_v0 = vpop.f32.mrf.mxu0 }
 0x1dd   : > { %1241 = vmatpush1.msra.mxu1 %v1057_v20  ;;  %1620 = vmatpush3.msra.mxu0 %v1025_v23  ;;  %v2204_v39 = vrot.slane %v1510_v1, %v715_v34 }
 0x1de   : > { %v836_v11 = vadd.f32 %v835_v9, %v2149_v5  ;;  %v834_v14 = vadd.f32 %v833_v3, %v2157_v8  ;;  %v840_v18 = vadd.f32 %v839_v15, %v2157_v8  ;;  %v842_v24 = vadd.f32 %v841_v22, %v2149_v5  ;;  %1262 = vmatprep.subr.mxu1 %v1805_v53  ;;  %v875_v3 = vpop.f32.mrf.mxu0 }
 0x1df   : > { %v846_v30 = vadd.f32 %v845_v27, %v2157_v8  ;;  %1263 = vmatpush2.msra.mxu1 %v1078_v25  ;;  %v848_v35 = vadd.f32 %v847_v32, %v2149_v5  ;;  %v852_v42 = vadd.f32 %v851_v38, %v2157_v8  ;;  %v854_v44 = vadd.f32 %v853_v43, %v2149_v5 }
 0x1e0   : > { %v994_v17 = vmax.f32 %v836_v11, 0.0  ;;  %v993_v21 = vmax.f32 %v834_v14, 0.0  ;;  %v997_v26 = vmax.f32 %v840_v18, 0.0  ;;  %v998_v29 = vmax.f32 %v842_v24, 0.0  ;;  %1264 = vmatprep.subr.mxu1 %v1805_v53  ;;  %v877_v7 = vpop.f32.mrf.mxu0 }
 0x1e1   : > { %1265 = vmatpush2.msra.mxu1 %v1077_v31  ;;  %v1001_v37 = vmax.f32 %v846_v30, 0.0  ;;  %v1002_v40 = vmax.f32 %v848_v35, 0.0  ;;  %v1005_v46 = vmax.f32 %v852_v42, 0.0  ;;  %v1006_v48 = vmax.f32 %v854_v44, 0.0 }
 0x1e2   : > { %1169 = vmatprep.mubr.f32.mxu0 %v994_v17  ;;  %1266 = vmatprep.subr.mxu1 %v1805_v53  ;;  %v858_v50 = vadd.f32 %v857_v47, %v2157_v8  ;;  %v860_v52 = vadd.f32 %v859_v51, %v2149_v5  ;;  %v864_v57 = vadd.f32 %v863_v55, %v2157_v8 }
 0x1e3   : > { %1170 = vmatmul.mubr.f32.vlgmr.msra.gmra.mxu0 %v993_v21  ;;  %1267 = vmatpush2.msra.mxu1 %v1076_v36  ;;  %v866_v59 = vadd.f32 %v865_v58, %v2149_v5  ;;  %v870_v63 = vadd.f32 %v869_v61, %v2157_v8  ;;  %v872_v1 = vadd.f32 %v871_v0, %v2149_v5 }
 0x1e4   : > { %1174 = vmatprep.mubr.f32.mxu0 %v998_v29  ;;  %1268 = vmatprep.subr.mxu1 %v1805_v53  ;;  %v1009_v54 = vmax.f32 %v858_v50, 0.0  ;;  %v1010_v56 = vmax.f32 %v860_v52, 0.0  ;;  %v1013_v60 = vmax.f32 %v864_v57, 0.0  ;;  %v876_v6 = vadd.f32 %v875_v3, %v2157_v8 }
 0x1e5   : > { %1269 = vmatpush2.msra.mxu1 %v1075_v41  ;;  %v1014_v62 = vmax.f32 %v866_v59, 0.0  ;;  %v1017_v2 = vmax.f32 %v870_v63, 0.0  ;;  %v1018_v4 = vmax.f32 %v872_v1, 0.0  ;;  %v878_v9 = vadd.f32 %v877_v7, %v2149_v5 }
 0x1e6   : > { %1270 = vmatprep.subr.mxu1 %v1805_v53  ;;  %v1021_v10 = vmax.f32 %v876_v6, 0.0 }
 0x1e7   : > { %1175 = vmatmul.mubr.f32.gmra.mxu0 %v997_v26  ;;  %1271 = vmatpush2.msra.mxu1 %v1074_v45  ;;  %v1022_v11 = vmax.f32 %v878_v9, 0.0 }
 0x1e8   : > { %1179 = vmatprep.mubr.f32.mxu0 %v1002_v40  ;;  %1272 = vmatprep.subr.mxu1 %v1805_v53 }
 0x1e9   : > { %1273 = vmatpush2.msra.mxu1 %v1073_v49 }
 0x1eb   : > { %1180 = vmatmul.mubr.f32.gmra.mxu0 %v1001_v37 }
 0x1ec   : > { %1184 = vmatprep.mubr.f32.mxu0 %v1006_v48 }
 0x1ef   : > { %1185 = vmatmul.mubr.f32.gmra.mxu0 %v1005_v46 }
 0x1f0   : > { %1189 = vmatprep.mubr.f32.mxu0 %v1010_v56 }
 0x1f3   : > { %1190 = vmatmul.mubr.f32.gmra.mxu0 %v1009_v54 }
 0x1f4   : > { %1194 = vmatprep.mubr.f32.mxu0 %v1014_v62 }
 0x1f7   : > { %1195 = vmatmul.mubr.f32.gmra.mxu0 %v1013_v60 }
 0x1f8   : > { %1199 = vmatprep.mubr.f32.mxu0 %v1018_v4 }
 0x1fb   : > { %1200 = vmatmul.mubr.f32.gmra.mxu0 %v1017_v2 }
 0x1fc   : > { %1204 = vmatprep.mubr.f32.mxu0 %v1022_v11 }
 0x1ff   : > { %1205 = vmatmul.mubr.f32.gmra.mxu0 %v1021_v10 }
 0x26c   : > { %v1703_v13 = vpop.f32.mrf.mxu1 }
 0x26d   : > { %v2231_v14 = vadd.f32 %v1703_v13, %v476_v12 }
 0x26e   : > { %v567_v15 = vpop.f32.mrf.mxu1 }
 0x26f   : > { %v2233_v16 = vadd.f32 %v567_v15, %v476_v12  ;;  %v609_v8 = vsel %vm334_vm1, %v2231_v14, -inf }
 0x270   : > { %610 = vmax.xlane.f32.xlu1 %v609_v8  ;;  %v1706_v5 = vpop.f32.mrf.mxu1 }
 0x271   : > { %v2237_v17 = vadd.f32 %v1706_v5, %v476_v12  ;;  %v606_v18 = vsel %vm334_vm1, %v2233_v16, -inf }
 0x272   : > { %v577_v19 = vpop.f32.mrf.mxu1  ;;  %607 = vmax.xlane.f32.xlu0 %v606_v18 }
 0x273   : > { %v2241_v21 = vadd.f32 %v577_v19, %v476_v12  ;;  %v615_v22 = vsel %vm334_vm1, %v2237_v17, -inf }
 0x274   : > { %v1709_v20 = vpop.f32.mrf.mxu1 }
 0x275   : > { %v2247_v26 = vadd.f32 %v1709_v20, %v476_v12  ;;  %v612_v28 = vsel %vm334_vm1, %v2241_v21, -inf }
 0x276   : > { %v587_v23 = vpop.f32.mrf.mxu1  ;;  %616 = vmax.xlane.f32.xlu0 %v615_v22 }
 0x277   : > { %v2245_v24 = vadd.f32 %v587_v23, %v476_v12  ;;  %v621_v35 = vsel %vm334_vm1, %v2247_v26, -inf }
 0x278   : > { %v1712_v25 = vpop.f32.mrf.mxu1 }
 0x279   : > { %v618_v27 = vsel %vm334_vm1, %v2245_v24, -inf  ;;  %v2255_v32 = vadd.f32 %v1712_v25, %v476_v12 }
 0x27a   : > { %v597_v29 = vpop.f32.mrf.mxu1  ;;  %619 = vmax.xlane.f32.xlu1 %v618_v27  ;;  %613 = vmax.xlane.f32.xlu0 %v612_v28 }
 0x27b   : > { %v2253_v30 = vadd.f32 %v597_v29, %v476_v12  ;;  %v627_v42 = vsel %vm334_vm1, %v2255_v32, -inf }
 0x27c   : > { %v946_v31 = vpop.f32.mrf.mxu1 }
 0x27d   : > { %v624_v34 = vsel %vm334_vm1, %v2253_v30, -inf  ;;  %v947_v36 = vadd.f32 %v946_v31, %v2196_v33 }
 0x27e   : > { %v948_v37 = vpop.f32.mrf.mxu1  ;;  %625 = vmax.xlane.f32.xlu1 %v624_v34  ;;  %622 = vmax.xlane.f32.xlu0 %v621_v35 }
 0x27f   : > { %v949_v38 = vadd.f32 %v948_v37, %v2204_v39  ;;  %v995_v43 = vmax.f32 %v947_v36, 0.0 }
 0x280   : > { %v952_v40 = vpop.f32.mrf.mxu1 }
 0x281   : > { %v996_v41 = vmax.f32 %v949_v38, 0.0  ;;  %v953_v44 = vadd.f32 %v952_v40, %v2196_v33 }
 0x282   : > { %v954_v45 = vpop.f32.mrf.mxu1  ;;  %628 = vmax.xlane.f32.xlu0 %v627_v42 }
 0x283   : > { %v955_v46 = vadd.f32 %v954_v45, %v2204_v39  ;;  %1531 = vmatprep.mubr.msk.f32.mxu1 %vm1080_vm4, %v996_v41  ;;  %v999_v49 = vmax.f32 %v953_v44, 0.0 }
 0x284   : > { %v958_v47 = vpop.f32.mrf.mxu1  ;;  %1275 = vmatmul.mubr.f32.vlgmr.msra.gmra.mxu1 %v995_v43 }
 0x285   : > { %v1000_v48 = vmax.f32 %v955_v46, 0.0  ;;  %v959_v50 = vadd.f32 %v958_v47, %v2196_v33 }
 0x286   : > { %v960_v51 = vpop.f32.mrf.mxu1 }
 0x287   : > { %v961_v52 = vadd.f32 %v960_v51, %v2204_v39  ;;  %1532 = vmatprep.mubr.msk.f32.mxu1 %vm1080_vm4, %v1000_v48  ;;  %v1003_v56 = vmax.f32 %v959_v50, 0.0 }
 0x288   : > { %v964_v54 = vpop.f32.mrf.mxu1  ;;  %1280 = vmatmul.mubr.f32.gmra.mxu1 %v999_v49 }
 0x289   : > { %v1004_v55 = vmax.f32 %v961_v52, 0.0  ;;  %v965_v57 = vadd.f32 %v964_v54, %v2196_v33 }
 0x28a   : > { %v966_v58 = vpop.f32.mrf.mxu1 }
 0x28b   : > { %v967_v59 = vadd.f32 %v966_v58, %v2204_v39  ;;  %1533 = vmatprep.mubr.msk.f32.mxu1 %vm1080_vm4, %v1004_v55  ;;  %v1007_v62 = vmax.f32 %v965_v57, 0.0 }
 0x28c   : > { %v970_v60 = vpop.f32.mrf.mxu1  ;;  %1285 = vmatmul.mubr.f32.gmra.mxu1 %v1003_v56 }
 0x28d   : > { %v1008_v61 = vmax.f32 %v967_v59, 0.0  ;;  %v971_v63 = vadd.f32 %v970_v60, %v2196_v33 }
 0x28e   : > { %v972_v0 = vpop.f32.mrf.mxu1 }
 0x28f   : > { %v973_v1 = vadd.f32 %v972_v0, %v2204_v39  ;;  %1534 = vmatprep.mubr.msk.f32.mxu1 %vm1080_vm4, %v1008_v61  ;;  %v1011_v4 = vmax.f32 %v971_v63, 0.0 }
 0x290   : > { %v976_v2 = vpop.f32.mrf.mxu1  ;;  %1290 = vmatmul.mubr.f32.gmra.mxu1 %v1007_v62 }
 0x291   : > { %v1012_v3 = vmax.f32 %v973_v1, 0.0  ;;  %v977_v6 = vadd.f32 %v976_v2, %v2196_v33 }
 0x292   : > { %v978_v7 = vpop.f32.mrf.mxu1 }
 0x293   : > { %v979_v9 = vadd.f32 %v978_v7, %v2204_v39  ;;  %1535 = vmatprep.mubr.msk.f32.mxu1 %vm1080_vm4, %v1012_v3  ;;  %v1015_v12 = vmax.f32 %v977_v6, 0.0 }
 0x294   : > { %v982_v10 = vpop.f32.mrf.mxu1  ;;  %1295 = vmatmul.mubr.f32.gmra.mxu1 %v1011_v4 }
 0x295   : > { %v1016_v11 = vmax.f32 %v979_v9, 0.0  ;;  %v983_v13 = vadd.f32 %v982_v10, %v2196_v33 }
 0x296   : > { %v984_v15 = vpop.f32.mrf.mxu1 }
 0x297   : > { %v985_v8 = vadd.f32 %v984_v15, %v2204_v39  ;;  %1536 = vmatprep.mubr.msk.f32.mxu1 %vm1080_vm4, %v1016_v11  ;;  %v1019_v19 = vmax.f32 %v983_v13, 0.0  ;;  %v2330_v11 = vld [vmem:[%s2416_s2 + $0x7] ss:$0 sm:$0xff] }
 0x298   : > { %v988_v5 = vpop.f32.mrf.mxu1  ;;  %1300 = vmatmul.mubr.f32.gmra.mxu1 %v1015_v12 }
 0x299   : > { %v1020_v18 = vmax.f32 %v985_v8, 0.0  ;;  %v989_v20 = vadd.f32 %v988_v5, %v2196_v33 }
 0x29a   : > { %v990_v22 = vpop.f32.mrf.mxu1 }
 0x29b   : > { %v991_v23 = vadd.f32 %v990_v22, %v2204_v39  ;;  %1537 = vmatprep.mubr.msk.f32.mxu1 %vm1080_vm4, %v1020_v18  ;;  %v1023_v27 = vmax.f32 %v989_v20, 0.0 }
 0x29c   : > { %1305 = vmatmul.mubr.f32.gmra.mxu1 %v1019_v19 }
 0x29d   : > { %v1024_v25 = vmax.f32 %v991_v23, 0.0 }
 0x29f   : > { %1538 = vmatprep.mubr.msk.f32.mxu1 %vm1080_vm4, %v1024_v25 }
 0x2a0   : > { %1310 = vmatmul.mubr.f32.gmra.mxu1 %v1023_v27 }
 0x2a3   : > { %v1621_v60 = vpop.f32.mrf.mxu0 }
 0x2a5   : > { %v1622_v0 = vpop.f32.mrf.mxu0 }
 0x2a6   : > { %v1623_v10 = vadd.f32 %v1622_v0, %v1621_v60 }
 0x2a7   : > { %v1624_v1 = vpop.f32.mrf.mxu0 }
 0x2a8   : > { %v1172_v15 = vadd.f32 %v1623_v10, %v2330_v11 }
 0x2a9   : > { %v1625_v2 = vpop.f32.mrf.mxu0 }
 0x2aa   : > { %v1626_v13 = vadd.f32 %v1625_v2, %v1624_v1 }
 0x2ab   : > { %v1627_v3 = vpop.f32.mrf.mxu0 }
 0x2ac   : > { %v1177_v23 = vadd.f32 %v1626_v13, %v2330_v11 }
 0x2ad   : > { %v1628_v4 = vpop.f32.mrf.mxu0 }
 0x2ae   : > { %v1629_v20 = vadd.f32 %v1628_v4, %v1627_v3 }
 0x2af   : > { %v1630_v6 = vpop.f32.mrf.mxu0 }
 0x2b1   : > { %v1631_v7 = vpop.f32.mrf.mxu0 }
 0x2b3   : > { %v1633_v9 = vpop.f32.mrf.mxu0 }
 0x2b5   : > { %v1634_v12 = vpop.f32.mrf.mxu0 }
 0x2b7   : > { %v1636_v5 = vpop.f32.mrf.mxu0 }
 0x2b9   : > { %v1637_v27 = vpop.f32.mrf.mxu0 }
 0x2f9   : > { %v611_v28 = vpop.xlane.xlu1 %610 }
 0x2fa   : > { %v631_v29 = vsub.f32 %v2231_v14, %v611_v28 }
 0x2fb   : > { %v608_v31 = vpop.xlane.xlu0 %607 }
 0x2fc   : > { %v640_v34 = vmul.f32 1.442695, %v631_v29  ;;  %v630_v35 = vsub.f32 %v2233_v16, %v608_v31  ;;  %v1632_v31 = vadd.f32 %v1631_v7, %v1630_v6 }
 0x2fe   : > { %1732 = vpow2.f32 %v640_v34  ;;  %v638_v33 = vmul.f32 1.442695, %v630_v35  ;;  %v1182_v35 = vadd.f32 %v1629_v20, %v2330_v11 }
 0x2ff   : > { %v617_v36 = vpop.xlane.xlu0 %616 }
 0x300   : > { %1734 = vpow2.f32 %v638_v33  ;;  %v633_v39 = vsub.f32 %v2237_v17, %v617_v36  ;;  %v1639_v36 = vpop.f32.mrf.mxu0 }
 0x302   : > { %v644_v37 = vmul.f32 1.442695, %v633_v39 }
 0x303   : > { %v620_v38 = vpop.xlane.xlu1 %619  ;;  %v614_v40 = vpop.xlane.xlu0 %613 }
 0x304   : > { %1736 = vpow2.f32 %v644_v37  ;;  %v634_v41 = vsub.f32 %v2245_v24, %v620_v38  ;;  %v632_v42 = vsub.f32 %v2241_v21, %v614_v40  ;;  %v1635_v38 = vadd.f32 %v1634_v12, %v1633_v9 }
 0x306   : > { %v642_v43 = vmul.f32 1.442695, %v632_v42  ;;  %v646_v14 = vmul.f32 1.442695, %v634_v41  ;;  %v1187_v41 = vadd.f32 %v1632_v31, %v2330_v11 }
 0x307   : > { %v626_v44 = vpop.xlane.xlu1 %625  ;;  %v623_v45 = vpop.xlane.xlu0 %622 }
 0x308   : > { %v636_v16 = vsub.f32 %v2253_v30, %v626_v44  ;;  %v635_v46 = vsub.f32 %v2247_v26, %v623_v45  ;;  %1738 = vpow2.f32 %v642_v43  ;;  %v1640_v43 = vpop.f32.mrf.mxu0  ;;  %v1638_v45 = vadd.f32 %v1637_v27, %v1636_v5 }
 0x309   : > { %1740 = vpow2.f32 %v646_v14 }
 0x30a   : > { %v648_v47 = vmul.f32 1.442695, %v635_v46  ;;  %v650_v17 = vmul.f32 1.442695, %v636_v16  ;;  %v1192_v46 = vadd.f32 %v1635_v38, %v2330_v11 }
 0x30b   : > { %v2294_v48 = vpop.eup %1732  ;;  %v629_v49 = vpop.xlane.xlu0 %628 }
 0x30c   : > { %v637_v50 = vsub.f32 %v2255_v32, %v629_v49  ;;  %v657_v21 = vsel %vm334_vm1, %v2294_v48, 0.0  ;;  %1742 = vpow2.f32 %v648_v47 }
 0x30d   : > { %v2299_v24 = vpop.eup %1734  ;;  %658 = vadd.xlane.f32.xlu0 %v657_v21  ;;  %1744 = vpow2.f32 %v650_v17  ;;  %v1642_v17 = vpop.f32.mrf.mxu0 }
 0x30e   : > { %v652_v51 = vmul.f32 1.442695, %v637_v50  ;;  %v654_v26 = vsel %vm334_vm1, %v2299_v24, 0.0 }
 0x30f   : > { %655 = vadd.xlane.f32.xlu1 %v654_v26  ;;  %v1641_v26 = vadd.f32 %v1640_v43, %v1639_v36 }
 0x310   : > { %1746 = vpow2.f32 %v652_v51 }
 0x311   : > { %v2303_v30 = vpop.eup %1736  ;;  %v1202_v3 = vadd.f32 %v1641_v26, %v2330_v11 }
 0x312   : > { %v663_v52 = vsel %vm334_vm1, %v2303_v30, 0.0 }
 0x313   : > { %664 = vadd.xlane.f32.xlu0 %v663_v52 }
 0x315   : > { %v2307_v32 = vpop.eup %1738 }
 0x316   : > { %v660_v54 = vsel %vm334_vm1, %v2307_v32, 0.0  ;;  %v2311_v55 = vpop.eup %1740 }
 0x317   : > { %661 = vadd.xlane.f32.xlu1 %v660_v54  ;;  %v666_v57 = vsel %vm334_vm1, %v2311_v55, 0.0  ;;  %v1197_v54 = vadd.f32 %v1638_v45, %v2330_v11 }
 0x319   : > { %v2313_v56 = vpop.eup %1742 }
 0x31a   : > { %v669_v58 = vsel %vm334_vm1, %v2313_v56, 0.0  ;;  %v2319_v59 = vpop.eup %1744 }
 0x31b   : > { %667 = vadd.xlane.f32.xlu1 %v666_v57  ;;  %670 = vadd.xlane.f32.xlu0 %v669_v58  ;;  %v672_v63 = vsel %vm334_vm1, %v2319_v59, 0.0  ;;  %v1643_v57 = vpop.f32.mrf.mxu0 }
 0x31c   : > { %v1644_v1 = vadd.f32 %v1643_v57, %v1642_v17 }
 0x31d   : > { %v2321_v61 = vpop.eup %1746 }
 0x31e   : > { %v675_v62 = vsel %vm334_vm1, %v2321_v61, 0.0  ;;  %v1207_v13 = vadd.f32 %v1644_v1, %v2330_v11 }
 0x31f   : > { %673 = vadd.xlane.f32.xlu1 %v672_v63  ;;  %676 = vadd.xlane.f32.xlu0 %v675_v62 }
 0x344   : > { %v1276_v8 = vpop.f32.mrf.mxu1 }
 0x345   : > { %v1277_v18 = vadd.f32 %v1276_v8, %v1172_v15 }
 0x346   : > { %v1278_v19 = vpop.f32.mrf.mxu1 }
 0x347   : > { %v1539_v22 = vmul.f32 -1.442695, %v1277_v18 }
 0x348   : > { %v1281_v25 = vpop.f32.mrf.mxu1 }
 0x349   : > { %1748 = vpow2.f32 %v1539_v22  ;;  %v1282_v28 = vadd.f32 %v1281_v25, %v1177_v23 }
 0x34a   : > { %v1283_v29 = vpop.f32.mrf.mxu1 }
 0x34b   : > { %v1540_v34 = vmul.f32 -1.442695, %v1282_v28 }
 0x34c   : > { %v1286_v33 = vpop.f32.mrf.mxu1 }
 0x34d   : > { %1750 = vpow2.f32 %v1540_v34  ;;  %v1287_v39 = vadd.f32 %v1286_v33, %v1182_v35 }
 0x34e   : > { %v1288_v37 = vpop.f32.mrf.mxu1 }
 0x34f   : > { %v1541_v40 = vmul.f32 -1.442695, %v1287_v39 }
 0x350   : > { %v1291_v42 = vpop.f32.mrf.mxu1 }
 0x351   : > { %1752 = vpow2.f32 %v1541_v40  ;;  %v1292_v14 = vadd.f32 %v1291_v42, %v1187_v41 }
 0x352   : > { %v1293_v44 = vpop.f32.mrf.mxu1 }
 0x353   : > { %v1542_v16 = vmul.f32 -1.442695, %v1292_v14 }
 0x354   : > { %v1296_v47 = vpop.f32.mrf.mxu1 }
 0x355   : > { %1754 = vpow2.f32 %v1542_v16  ;;  %v1297_v49 = vadd.f32 %v1296_v47, %v1192_v46 }
 0x356   : > { %v1749_v50 = vpop.eup %1748  ;;  %v1298_v21 = vpop.f32.mrf.mxu1 }
 0x357   : > { %v1339_v51 = vadd.f32 1.0, %v1749_v50  ;;  %v1543_v52 = vmul.f32 -1.442695, %v1297_v49 }
 0x358   : > { %v1301_v58 = vpop.f32.mrf.mxu1 }
 0x359   : > { %1756 = vrcp.f32 %v1339_v51  ;;  %v1302_v60 = vadd.f32 %v1301_v58, %v1197_v54 }
 0x35a   : > { %v1751_v62 = vpop.eup %1750  ;;  %1758 = vpow2.f32 %v1543_v52  ;;  %v1303_v63 = vpop.f32.mrf.mxu1 }
 0x35b   : > { %v1340_v0 = vadd.f32 1.0, %v1751_v62  ;;  %v1544_v2 = vmul.f32 -1.442695, %v1302_v60 }
 0x35c   : > { %v1306_v4 = vpop.f32.mrf.mxu1 }
 0x35d   : > { %1760 = vrcp.f32 %v1340_v0  ;;  %v1307_v6 = vadd.f32 %v1306_v4, %v1202_v3 }
 0x35e   : > { %v1753_v7 = vpop.eup %1752  ;;  %1762 = vpow2.f32 %v1544_v2  ;;  %v1308_v9 = vpop.f32.mrf.mxu1 }
 0x35f   : > { %v1341_v10 = vadd.f32 1.0, %v1753_v7  ;;  %v1545_v12 = vmul.f32 -1.442695, %v1307_v6 }
 0x360   : > { %v1311_v15 = vpop.f32.mrf.mxu1 }
 0x361   : > { %1764 = vrcp.f32 %v1341_v10  ;;  %v1312_v8 = vadd.f32 %v1311_v15, %v1207_v13 }
 0x362   : > { %v1755_v5 = vpop.eup %1754  ;;  %1766 = vpow2.f32 %v1545_v12  ;;  %v1313_v18 = vpop.f32.mrf.mxu1 }
 0x363   : > { %v1342_v19 = vadd.f32 1.0, %v1755_v5  ;;  %v1546_v20 = vmul.f32 -1.442695, %v1312_v8 }
 0x365   : > { %1768 = vrcp.f32 %v1342_v19 }
 0x366   : > { %v1757_v22 = vpop.eup %1756  ;;  %1770 = vpow2.f32 %v1546_v20 }
 0x367   : > { %v1759_v23 = vpop.eup %1758  ;;  %1379 = vrot.lane.b32.xlu1 %v1757_v22, %s1806_s7 }
 0x368   : > { %v1343_v25 = vadd.f32 1.0, %v1759_v23 }
 0x36a   : > { %v1761_v27 = vpop.eup %1760  ;;  %1772 = vrcp.f32 %v1343_v25 }
 0x36b   : > { %v1763_v28 = vpop.eup %1762  ;;  %1381 = vrot.lane.b32.xlu0 %v1761_v27, %s1806_s7 }
 0x36c   : > { %v1344_v11 = vadd.f32 1.0, %v1763_v28 }
 0x36e   : > { %v1765_v29 = vpop.eup %1764  ;;  %1774 = vrcp.f32 %v1344_v11 }
 0x36f   : > { %v1767_v31 = vpop.eup %1766  ;;  %1383 = vrot.lane.b32.xlu1 %v1765_v29, %s1806_s7 }
 0x370   : > { %v1345_v34 = vadd.f32 1.0, %v1767_v31 }
 0x372   : > { %v1769_v35 = vpop.eup %1768  ;;  %1776 = vrcp.f32 %v1345_v34 }
 0x373   : > { %v1771_v33 = vpop.eup %1770  ;;  %1385 = vrot.lane.b32.xlu1 %v1769_v35, %s1806_s7 }
 0x374   : > { %v1346_v36 = vadd.f32 1.0, %v1771_v33 }
 0x376   : > { %1778 = vrcp.f32 %v1346_v36 }
 0x377   : > { %v1773_v39 = vpop.eup %1772 }
 0x378   : > { %1387 = vrot.lane.b32.xlu0 %v1773_v39, %s1806_s7 }
 0x37b   : > { %v1775_v37 = vpop.eup %1774 }
 0x37c   : > { %1389 = vrot.lane.b32.xlu1 %v1775_v37, %s1806_s7 }
 0x37f   : > { %v1777_v38 = vpop.eup %1776 }
 0x380   : > { %1391 = vrot.lane.b32.xlu0 %v1777_v38, %s1806_s7 }
 0x383   : > { %v1779_v40 = vpop.eup %1778 }
 0x384   : > { %1393 = vrot.lane.b32.xlu1 %v1779_v40, %s1806_s7 }
 0x396   : > { %v659_v41 = vpop.xlane.xlu0 %658 }
 0x397   : > { %1780 = vrcp.f32 %v659_v41 }
 0x398   : > { %v656_v42 = vpop.xlane.xlu1 %655 }
 0x399   : > { %1782 = vrcp.f32 %v656_v42 }
 0x39c   : > { %v665_v43 = vpop.xlane.xlu0 %664 }
 0x39d   : > { %1784 = vrcp.f32 %v665_v43 }
 0x3a0   : > { %v662_v14 = vpop.xlane.xlu1 %661 }
 0x3a1   : > { %1786 = vrcp.f32 %v662_v14 }
 0x3a4   : > { %v1781_v44 = vpop.eup %1780  ;;  %v668_v45 = vpop.xlane.xlu1 %667 }
 0x3a5   : > { %v671_v16 = vpop.xlane.xlu0 %670  ;;  %v681_v46 = vmul.f32 %v1781_v44, %v2294_v48  ;;  %1788 = vrcp.f32 %v668_v45 }
 0x3a6   : > { %v1783_v47 = vpop.eup %1782  ;;  %1790 = vrcp.f32 %v671_v16 }
 0x3a7   : > { %v679_v17 = vmul.f32 %v1783_v47, %v2299_v24  ;;  %1364 = vst.msk [vmem:[%s2345_s10 + $0x8] sm:$0xff] %vm334_vm1, %v681_v46 }
 0x3a8   : > { %v674_v49 = vpop.xlane.xlu1 %673 }
 0x3a9   : > { %v677_v50 = vpop.xlane.xlu0 %676  ;;  %1363 = vst.msk [vmem:[%s2345_s10] sm:$0xff] %vm334_vm1, %v679_v17  ;;  %1792 = vrcp.f32 %v674_v49 }
 0x3aa   : > { %v1785_v21 = vpop.eup %1784  ;;  %1794 = vrcp.f32 %v677_v50 }
 0x3ab   : > { %v685_v48 = vmul.f32 %v1785_v21, %v2303_v30 }
 0x3ad   : > { %1366 = vst.msk [vmem:[%s2345_s10 + $0x18] sm:$0xff] %vm334_vm1, %v685_v48 }
 0x3ae   : > { %v1787_v51 = vpop.eup %1786 }
 0x3af   : > { %v683_v24 = vmul.f32 %v1787_v51, %v2307_v32 }
 0x3b1   : > { %1365 = vst.msk [vmem:[%s2345_s10 + $0x10] sm:$0xff] %vm334_vm1, %v683_v24 }
 0x3b2   : > { %v1789_v26 = vpop.eup %1788 }
 0x3b3   : > { %v1791_v52 = vpop.eup %1790  ;;  %v687_v54 = vmul.f32 %v1789_v26, %v2311_v55 }
 0x3b4   : > { %v689_v57 = vmul.f32 %v1791_v52, %v2313_v56 }
 0x3b5   : > { %1367 = vst.msk [vmem:[%s2345_s10 + $0x20] sm:$0xff] %vm334_vm1, %v687_v54 }
 0x3b6   : > { %v1793_v30 = vpop.eup %1792  ;;  %1368 = vst.msk [vmem:[%s2345_s10 + $0x28] sm:$0xff] %vm334_vm1, %v689_v57 }
 0x3b7   : > { %v1795_v32 = vpop.eup %1794  ;;  %v691_v58 = vmul.f32 %v1793_v30, %v2319_v59 }
 0x3b8   : > { %v693_v60 = vmul.f32 %v1795_v32, %v2321_v61 }
 0x3b9   : > { %1369 = vst.msk [vmem:[%s2345_s10 + $0x30] sm:$0xff] %vm334_vm1, %v691_v58 }
 0x3ba   : > { %1370 = vst.msk [vmem:[%s2345_s10 + $0x38] sm:$0xff] %vm334_vm1, %v693_v60 }
 0x3d9   : > { %v1380_v55 = vpop.permute.xlu1 %1379 }
 0x3da   : > { %1404 = vst.msk [vmem:[%s2345_s10] sm:$0xff] %vm1403_vm5, %v1380_v55 }
 0x3db   : > { %1413 = vst.msk [vmem:[%s2345_s10] sm:$0xff] %vm1412_vm6, %v1805_v53 }
 0x3dd   : > { %v1382_v56 = vpop.permute.xlu0 %1381 }
 0x3de   : > { %1405 = vst.msk [vmem:[%s2345_s10 + $0x8] sm:$0xff] %vm1403_vm5, %v1382_v56 }
 0x3df   : > { %1414 = vst.msk [vmem:[%s2345_s10 + $0x8] sm:$0xff] %vm1412_vm6, %v1805_v53 }
 0x3e1   : > { %v1384_v59 = vpop.permute.xlu1 %1383 }
 0x3e2   : > { %1406 = vst.msk [vmem:[%s2345_s10 + $0x10] sm:$0xff] %vm1403_vm5, %v1384_v59 }
 0x3e3   : > { %1415 = vst.msk [vmem:[%s2345_s10 + $0x10] sm:$0xff] %vm1412_vm6, %v1805_v53 }
 0x3e5   : > { %v1386_v61 = vpop.permute.xlu1 %1385 }
 0x3e6   : > { %1407 = vst.msk [vmem:[%s2345_s10 + $0x18] sm:$0xff] %vm1403_vm5, %v1386_v61 }
 0x3e7   : > { %1416 = vst.msk [vmem:[%s2345_s10 + $0x18] sm:$0xff] %vm1412_vm6, %v1805_v53 }
 0x3ea   : > { %v1388_v62 = vpop.permute.xlu0 %1387 }
 0x3eb   : > { %1408 = vst.msk [vmem:[%s2345_s10 + $0x20] sm:$0xff] %vm1403_vm5, %v1388_v62 }
 0x3ec   : > { %1417 = vst.msk [vmem:[%s2345_s10 + $0x20] sm:$0xff] %vm1412_vm6, %v1805_v53 }
 0x3ee   : > { %v1390_v63 = vpop.permute.xlu1 %1389 }
 0x3ef   : > { %1409 = vst.msk [vmem:[%s2345_s10 + $0x28] sm:$0xff] %vm1403_vm5, %v1390_v63 }
 0x3f0   : > { %1418 = vst.msk [vmem:[%s2345_s10 + $0x28] sm:$0xff] %vm1412_vm6, %v1805_v53 }
 0x3f2   : > { %v1392_v0 = vpop.permute.xlu0 %1391 }
 0x3f3   : > { %1410 = vst.msk [vmem:[%s2345_s10 + $0x30] sm:$0xff] %vm1403_vm5, %v1392_v0 }
 0x3f4   : > { %1419 = vst.msk [vmem:[%s2345_s10 + $0x30] sm:$0xff] %vm1412_vm6, %v1805_v53 }
 0x3f6   : > { %v1394_v1 = vpop.permute.xlu1 %1393 }
 0x3f7   : > { %1411 = vst.msk [vmem:[%s2345_s10 + $0x38] sm:$0xff] %vm1403_vm5, %v1394_v1 }
 0x3f8   : > { %1420 = vst.msk [vmem:[%s2345_s10 + $0x38] sm:$0xff] %vm1412_vm6, %v1805_v53 }
 0x3f9 PF: > { %s13_s12 = sadd.s32 1, %s1802_s12  }
 0x3fa   : > { %p10_p4 = scmp.ge.s32.totalorder %s13_s12, 4  }
 0x3fc   :  { %12 = sbr.rel (!%p10_p4) target bundleno = 1 (0x1), region = 63 }

</bundles_post_ra>
